<compile_context>
chip_gen: v5e
topology: v5e:2x2
jax: 0.10.0
libtpu: 0.0.40
codegen_flags: <defaults>
</compile_context>

<pallas_src>
import functools

import jax
import jax.numpy as jnp
from jax import lax
from jax.experimental import pallas as pl
from jax.experimental.pallas import tpu as pltpu


def _dice_kernel(logits_ref, target_ref, inter_out_ref, total_out_ref,
                 inter_acc, total_acc, *, hw, needs_mask):
    j = pl.program_id(1)

    @pl.when(j == 0)
    def _():
        inter_acc[...] = jnp.zeros_like(inter_acc)
        total_acc[...] = jnp.zeros_like(total_acc)

    c, t = inter_acc.shape                      # (C, tile_hw)

    x = logits_ref[0].astype(jnp.float32)       # (C, T) classes on sublanes
    tgt = target_ref[0]                         # (1, T) int32

    if needs_mask:
        # Ragged tail: columns past the true HW extent hold garbage from the
        # clamped DMA.  Neutralize them before softmax (avoid NaN/Inf) and
        # zero their contributions afterwards.
        col = lax.broadcasted_iota(jnp.int32, (1, t), 1) + j * t
        valid = col < hw                        # (1, T) bool
        x = jnp.where(valid, x, 0.0)

    # --- softmax over the class (sublane) axis -----------------------------
    m = jnp.max(x, axis=0, keepdims=True)       # (1, T)
    e = jnp.exp(x - m)                          # (C, T)  EUP
    denom = jnp.sum(e, axis=0, keepdims=True)   # (1, T)
    p = e * pl.reciprocal(denom, approx=True)   # (C, T)  EUP vrcp

    # --- one-hot of target --------------------------------------------------
    cls_iota = lax.broadcasted_iota(jnp.int32, (c, t), 0)
    onehot = (tgt == cls_iota).astype(jnp.float32)   # (C, T)

    if needs_mask:
        vf = valid.astype(jnp.float32)
        p = p * vf
        onehot = onehot * vf

    # --- elementwise accumulation (VPU only; no per-tile XLU reduce) --------
    inter_acc[...] += p * onehot
    total_acc[...] += p + onehot

    # --- epilogue: one cross-lane reduce per batch element -------------------
    @pl.when(j == pl.num_programs(1) - 1)
    def _():
        inter_out_ref[...] = jnp.sum(inter_acc[...], axis=1).reshape(1, 1, c)
        total_out_ref[...] = jnp.sum(total_acc[...], axis=1).reshape(1, 1, c)


def dice_loss(output, target, eps=1e-8, tile_hw=2048):
    """output: (N, C, H, W) float (any dtype), target: (N, H, W) int.

    Returns the scalar Dice loss (ignore_index=None branch of the module).
    """
    n, c, h, w = output.shape
    hw = h * w

    # Free reshapes of the native contiguous layouts — no transpose, no pad,
    # no dtype cast in HBM.
    logits = output.reshape(n, c, hw)
    tgt = target.reshape(n, 1, hw).astype(jnp.int32)

    dtype_bytes = jnp.dtype(output.dtype).itemsize

    # Tile selection: largest multiple of 128 within the requested size and a
    # conservative VMEM budget (double-buffered inputs + 2 f32 accumulators),
    # safe for v7x's smaller scoped VMEM.
    budget = 8 * 1024 * 1024
    per_lane_bytes = 2 * (c * dtype_bytes + 4) + 2 * c * 4
    max_tile = max(128, (budget // per_lane_bytes) // 128 * 128)
    tile = max(128, (min(tile_hw, max_tile) // 128) * 128)
    if hw <= tile:
        tile = hw                      # full-extent last dim (always legal)
    num_tiles = pl.cdiv(hw, tile)
    needs_mask = (hw % tile) != 0

    kernel = functools.partial(_dice_kernel, hw=hw, needs_mask=needs_mask)

    cost = pl.CostEstimate(
        flops=10 * n * c * hw,
        transcendentals=n * c * hw,
        bytes_accessed=n * c * hw * dtype_bytes + n * hw * 4 + 2 * n * c * 4,
    )

    inter, total = pl.pallas_call(
        kernel,
        out_shape=(jax.ShapeDtypeStruct((n, 1, c), jnp.float32),
                   jax.ShapeDtypeStruct((n, 1, c), jnp.float32)),
        grid_spec=pltpu.PrefetchScalarGridSpec(
            num_scalar_prefetch=0,
            grid=(n, num_tiles),
            in_specs=[
                pl.BlockSpec((1, c, tile), lambda b, j: (b, 0, j)),
                pl.BlockSpec((1, 1, tile), lambda b, j: (b, 0, j)),
            ],
            out_specs=[
                pl.BlockSpec((1, 1, c), lambda b, j: (b, 0, 0)),
                pl.BlockSpec((1, 1, c), lambda b, j: (b, 0, 0)),
            ],
            scratch_shapes=[
                pltpu.VMEM((c, tile), jnp.float32),  # inter accumulator
                pltpu.VMEM((c, tile), jnp.float32),  # total accumulator
            ],
        ),
        compiler_params=pltpu.CompilerParams(
            dimension_semantics=("parallel", "arbitrary")),
        cost_estimate=cost,
    )(logits, tgt)

    # Tiny final reduction (O(N*C)) in the wrapper.
    inter_c = jnp.sum(inter, axis=(0, 1))        # (C,)
    total_c = jnp.sum(total, axis=(0, 1))        # (C,)
    dice = 2.0 * inter_c / (total_c + eps)
    return 1.0 - jnp.mean(dice)

# TODO(synk): ignore_index != None branch of the module is not implemented
# (the module default ignore_index=None is what this kernel reproduces).


def _dice_loss_ref(output, target, eps=1e-8):
    """Pure-JAX reference matching the PyTorch module (ignore_index=None)."""
    n, c = output.shape[0], output.shape[1]
    pred = jax.nn.softmax(output, axis=1).reshape(n, c, -1)
    tgt = target.reshape(n, -1)
    onehot = jax.nn.one_hot(tgt, c, dtype=pred.dtype)          # (N, P, C)
    onehot = jnp.transpose(onehot, (0, 2, 1))                  # (N, C, P)
    inter = jnp.sum(pred * onehot, axis=(0, 2))
    total = jnp.sum(pred + onehot, axis=(0, 2))
    dice = 2.0 * inter / (total + eps)
    return 1.0 - jnp.mean(dice)


if __name__ == "__main__":
    key = jax.random.PRNGKey(0)
    k1, k2 = jax.random.split(key)

    N, C, H, W = 2, 4, 16, 16
    logits = jax.random.normal(k1, (N, C, H, W), dtype=jnp.float32)
    target = jax.random.randint(k2, (N, H, W), 0, C, dtype=jnp.int32)

    loss = jax.jit(dice_loss)(logits, target)
    loss = jax.block_until_ready(loss)

    ref = _dice_loss_ref(logits, target)
    # Tolerance loosened to 1e-3 because the kernel uses the EUP approximate
    # reciprocal for the softmax denominator (per-pixel relative error ~1e-4).
    assert jnp.allclose(loss, ref, atol=1e-3, rtol=1e-3), (loss, ref)

    print("KERNEL_OK")
</pallas_src>

<mosaic_0001>
module attributes {stable_mosaic.version = 11 : i64} {
  func.func @_dice_kernel(%arg0: i32, %arg1: i32, %arg2: memref<1x4x256xf32, #tpu.memory_space<vmem>>, %arg3: memref<1x1x256xi32, #tpu.memory_space<vmem>>, %arg4: memref<1x1x4xf32, #tpu.memory_space<vmem>>, %arg5: memref<1x1x4xf32, #tpu.memory_space<vmem>>, %arg6: memref<4x256xf32, #tpu.memory_space<vmem>>, %arg7: memref<4x256xf32, #tpu.memory_space<vmem>>) attributes {dimension_semantics = [#tpu.dimension_semantics<parallel>, #tpu.dimension_semantics<arbitrary>], iteration_bounds = array<i64: 2, 1>, scalar_prefetch = 0 : i64, scratch_operands = 2 : i64, tpu.core_type = #tpu.core_type<tc>, window_params = [{transform_indices = @transform_0, window_bounds = array<i64: 1, 4, 256>}, {transform_indices = @transform_1, window_bounds = array<i64: 1, 1, 256>}, {transform_indices = @transform_2, window_bounds = array<i64: 1, 1, 4>}, {transform_indices = @transform_3, window_bounds = array<i64: 1, 1, 4>}]} {
    %c0_i32 = arith.constant 0 : i32
    %0 = arith.cmpi eq, %arg1, %c0_i32 : i32
    %1 = arith.extui %0 : i1 to i32
    %c0_i32_0 = arith.constant 0 : i32
    %2 = arith.cmpi ne, %1, %c0_i32_0 : i32
    scf.if %2 {
      %cst_17 = arith.constant 0.000000e+00 : f32
      %33 = vector.broadcast %cst_17 : f32 to vector<4x256xf32>
      %c0_18 = arith.constant 0 : index
      %c0_19 = arith.constant 0 : index
      %34 = vector.load %arg6[%c0_18, %c0_19] : memref<4x256xf32, #tpu.memory_space<vmem>>, vector<4x256xf32>
      tpu.vector_store %arg6[%c0_18, %c0_19], %33 {strides = array<i32>} : memref<4x256xf32, #tpu.memory_space<vmem>>, vector<4x256xf32>,
      %cst_20 = arith.constant 0.000000e+00 : f32
      %35 = vector.broadcast %cst_20 : f32 to vector<4x256xf32>
      %c0_21 = arith.constant 0 : index
      %c0_22 = arith.constant 0 : index
      %36 = vector.load %arg7[%c0_21, %c0_22] : memref<4x256xf32, #tpu.memory_space<vmem>>, vector<4x256xf32>
      tpu.vector_store %arg7[%c0_21, %c0_22], %35 {strides = array<i32>} : memref<4x256xf32, #tpu.memory_space<vmem>>, vector<4x256xf32>,
    } else {
    }
    %c0 = arith.constant 0 : index
    %c0_1 = arith.constant 0 : index
    %c0_2 = arith.constant 0 : index
    %3 = vector.load %arg2[%c0, %c0_1, %c0_2] : memref<1x4x256xf32, #tpu.memory_space<vmem>>, vector<1x4x256xf32>
    %4 = vector.shape_cast %3 : vector<1x4x256xf32> to vector<4x256xf32>
    %c0_3 = arith.constant 0 : index
    %c0_4 = arith.constant 0 : index
    %c0_5 = arith.constant 0 : index
    %5 = vector.load %arg3[%c0_3, %c0_4, %c0_5] : memref<1x1x256xi32, #tpu.memory_space<vmem>>, vector<1x1x256xi32>
    %6 = vector.shape_cast %5 : vector<1x1x256xi32> to vector<1x256xi32>
    %cst = arith.constant dense<0xFF800000> : vector<256xf32>
    %7 = vector.multi_reduction <maximumf>, %4, %cst [0] : vector<4x256xf32> to vector<256xf32>
    %8 = vector.shape_cast %7 : vector<256xf32> to vector<1x256xf32>
    %9 = vector.broadcast %8 : vector<1x256xf32> to vector<4x256xf32>
    %10 = arith.subf %4, %9 : vector<4x256xf32>
    %11 = math.exp %10 : vector<4x256xf32>
    %cst_6 = arith.constant dense<0.000000e+00> : vector<256xf32>
    %12 = vector.multi_reduction <add>, %11, %cst_6 [0] : vector<4x256xf32> to vector<256xf32>
    %13 = vector.shape_cast %12 : vector<256xf32> to vector<1x256xf32>
    %14 = tpu.reciprocal %13 {approx = true} : vector<1x256xf32> -> vector<1x256xf32>
    %15 = vector.broadcast %14 : vector<1x256xf32> to vector<4x256xf32>
    %16 = arith.mulf %11, %15 : vector<4x256xf32>
    %17 = tpu.iota {dimensions = array<i32: 0>} : vector<4x256xi32>
    %18 = vector.broadcast %6 : vector<1x256xi32> to vector<4x256xi32>
    %19 = arith.cmpi eq, %18, %17 : vector<4x256xi32>
    %20 = arith.extui %19 : vector<4x256xi1> to vector<4x256xi32>
    %21 = arith.sitofp %20 : vector<4x256xi32> to vector<4x256xf32>
    %c0_7 = arith.constant 0 : index
    %c0_8 = arith.constant 0 : index
    %22 = vector.load %arg6[%c0_7, %c0_8] : memref<4x256xf32, #tpu.memory_space<vmem>>, vector<4x256xf32>
    %23 = arith.mulf %16, %21 : vector<4x256xf32>
    %24 = arith.addf %22, %23 : vector<4x256xf32>
    %c0_9 = arith.constant 0 : index
    %c0_10 = arith.constant 0 : index
    %25 = vector.load %arg6[%c0_9, %c0_10] : memref<4x256xf32, #tpu.memory_space<vmem>>, vector<4x256xf32>
    tpu.vector_store %arg6[%c0_9, %c0_10], %24 {strides = array<i32>} : memref<4x256xf32, #tpu.memory_space<vmem>>, vector<4x256xf32>,
    %c0_11 = arith.constant 0 : index
    %c0_12 = arith.constant 0 : index
    %26 = vector.load %arg7[%c0_11, %c0_12] : memref<4x256xf32, #tpu.memory_space<vmem>>, vector<4x256xf32>
    %27 = arith.addf %16, %21 : vector<4x256xf32>
    %28 = arith.addf %26, %27 : vector<4x256xf32>
    %c0_13 = arith.constant 0 : index
    %c0_14 = arith.constant 0 : index
    %29 = vector.load %arg7[%c0_13, %c0_14] : memref<4x256xf32, #tpu.memory_space<vmem>>, vector<4x256xf32>
    tpu.vector_store %arg7[%c0_13, %c0_14], %28 {strides = array<i32>} : memref<4x256xf32, #tpu.memory_space<vmem>>, vector<4x256xf32>,
    %c0_i32_15 = arith.constant 0 : i32
    %30 = arith.cmpi eq, %arg1, %c0_i32_15 : i32
    %31 = arith.extui %30 : i1 to i32
    %c0_i32_16 = arith.constant 0 : i32
    %32 = arith.cmpi ne, %31, %c0_i32_16 : i32
    scf.if %32 {
      %c0_17 = arith.constant 0 : index
      %c0_18 = arith.constant 0 : index
      %33 = vector.load %arg6[%c0_17, %c0_18] : memref<4x256xf32, #tpu.memory_space<vmem>>, vector<4x256xf32>
      %cst_19 = arith.constant dense<0.000000e+00> : vector<4xf32>
      %34 = vector.multi_reduction <add>, %33, %cst_19 [1] : vector<4x256xf32> to vector<4xf32>
      %35 = vector.shape_cast %34 : vector<4xf32> to vector<1x1x4xf32>
      %c0_20 = arith.constant 0 : index
      %c0_21 = arith.constant 0 : index
      %c0_22 = arith.constant 0 : index
      %36 = vector.load %arg4[%c0_20, %c0_21, %c0_22] : memref<1x1x4xf32, #tpu.memory_space<vmem>>, vector<1x1x4xf32>
      tpu.vector_store %arg4[%c0_20, %c0_21, %c0_22], %35 {strides = array<i32>} : memref<1x1x4xf32, #tpu.memory_space<vmem>>, vector<1x1x4xf32>,
      %c0_23 = arith.constant 0 : index
      %c0_24 = arith.constant 0 : index
      %37 = vector.load %arg7[%c0_23, %c0_24] : memref<4x256xf32, #tpu.memory_space<vmem>>, vector<4x256xf32>
      %cst_25 = arith.constant dense<0.000000e+00> : vector<4xf32>
      %38 = vector.multi_reduction <add>, %37, %cst_25 [1] : vector<4x256xf32> to vector<4xf32>
      %39 = vector.shape_cast %38 : vector<4xf32> to vector<1x1x4xf32>
      %c0_26 = arith.constant 0 : index
      %c0_27 = arith.constant 0 : index
      %c0_28 = arith.constant 0 : index
      %40 = vector.load %arg5[%c0_26, %c0_27, %c0_28] : memref<1x1x4xf32, #tpu.memory_space<vmem>>, vector<1x1x4xf32>
      tpu.vector_store %arg5[%c0_26, %c0_27, %c0_28], %39 {strides = array<i32>} : memref<1x1x4xf32, #tpu.memory_space<vmem>>, vector<1x1x4xf32>,
    } else {
    }
    return
  }
  func.func @transform_0(%arg0: i32, %arg1: i32) -> (i32, i32, i32) {
    %c0_i32 = arith.constant 0 : i32
    %c0_i32_0 = arith.constant 0 : i32
    return %arg0, %c0_i32, %arg1 : i32, i32, i32
  }
  func.func @transform_1(%arg0: i32, %arg1: i32) -> (i32, i32, i32) {
    %c0_i32 = arith.constant 0 : i32
    %c0_i32_0 = arith.constant 0 : i32
    return %arg0, %c0_i32, %arg1 : i32, i32, i32
  }
  func.func @transform_2(%arg0: i32, %arg1: i32) -> (i32, i32, i32) {
    %c0_i32 = arith.constant 0 : i32
    %c0_i32_0 = arith.constant 0 : i32
    %c0_i32_1 = arith.constant 0 : i32
    return %arg0, %c0_i32, %c0_i32_0 : i32, i32, i32
  }
  func.func @transform_3(%arg0: i32, %arg1: i32) -> (i32, i32, i32) {
    %c0_i32 = arith.constant 0 : i32
    %c0_i32_0 = arith.constant 0 : i32
    %c0_i32_1 = arith.constant 0 : i32
    return %arg0, %c0_i32, %c0_i32_0 : i32, i32, i32
  }
}

</mosaic_0001>

<bundles_post_ra>
// kernel: dice_loss.1
= control target key start
LH: loop header
LB: loop body
LE: loop exit
PB: predicated region body
PF: predicated region fallthrough
CT: control target
= control target key end

     0   :  { %s553_s12 = smov 0   ;;  %s555_s13 = smov 0   ;;  %s609_s0 = inlined_call_operand.vmem [shape: f32[2,4,256], index: 0, kind: input, shape index: {}]   ;;  %s610_s1 = inlined_call_operand.vmem [shape: s32[2,1,256], index: 1, kind: input, shape index: {}]   ;;  %s611_s2 = inlined_call_operand.vmem [shape: f32[2,1,4], index: 2, kind: output, shape index: {0}]   ;;  %s612_s3 = inlined_call_operand.vmem [shape: f32[2,1,4], index: 3, kind: output, shape index: {1}]  }
   0x1   :  { %s557_s14 = smov 0  }
   0x2 LB: > { %s26_s15 = sadd.s32 1, %s526_s13  ;;  %p468_p0 = scmp.ge.s32.totalorder %s530_s14, 1  ;;  %s530_s14 = sphi %s557_s14, %s14_s14   ;;  %s526_s13 = sphi %s555_s13, %s614_s13   ;;  %s522_s12 = sphi %s553_s12, %s613_s12  }
   0x3   : > { %p28_p1 = scmp.ge.s32.totalorder %s26_s15, 2  ;;  %p175_p2 = scmp.lt.s32.totalorder %s530_s14, 3 }
   0x5   : > { %s616_s15 = smov (%p28_p1, %s26_s15), 0  ;;  %p176_p3 = pnand %p468_p0, %p175_p2 }
   0x6   : > { %p213_p4 = scmp.lt.s32.totalorder (!%p176_p3), %s522_s12, 1 }
   0x7   : > { %179 = sbr.rel (%p176_p3) target bundleno = 225 (0xe1), region = 28 }
   0xc   : > { %s618_s12 = smov (!%p213_p4, %s522_s12), 1  ;;  %vm251_vm0 = vcmask 1043456   ;;  %v302_v32 = vlaneseq  ;;  %v532_v43 = vmov 0.0   ;;  %vm345_vm3 = vcmask 24576  }
   0xd   : > { %s476_s16 = sshll.u32 %s618_s12, 3  ;;  %s471_s20 = sshll.u32 %s618_s12, 1 }
   0xe   : > { %s220_s19 = scalar_lea.vmem %s609_s0, %s476_s16  ;;  %s229_s23 = scalar_lea.vmem %s610_s1, %s471_s20  ;;  %v303_v38 = vshrl.u32 %v302_v32, 7 }
   0xf   : > { %v243_v0 = vld [vmem:[%s220_s19] sm:$0xff]  ;;  %s233_s26 = scalar_lea.vmem %s611_s2, %s618_s12  ;;  %s236_s29 = scalar_lea.vmem %s612_s3, %s618_s12 }
  0x10   : > { %246 = vst [vmem:[#allocation1] ss:$2 sm:$0xff] %v243_v0  ;;  %v244_v33 = vld [vmem:[%s229_s23] sm:$0x3] }
  0x11   : > { %v305_v39 = vperm.slane %v244_v33, 1  ;;  %v304_v42 = vperm.slane %v244_v33, 0 }
  0x13   : > { %vm307_vm1 = vcmp.eq.s32.totalorder %v305_v39, %v303_v38  ;;  %vm306_vm2 = vcmp.eq.s32.totalorder %v304_v42, %v303_v38 }
  0x14   : > { %v473_v44 = vsel %vm307_vm1, 1.0, %v532_v43  ;;  %v472_v48 = vsel %vm306_vm2, 1.0, %v532_v43 }
  0x15   : > { %v315_v46 = vrot.slane %v473_v44, 4 }
  0x17   : > { %v247_v1 = vld.sshfl [vmem:[#allocation1] sm:$0xff pattern:$0x75316420]  ;;  %v248_v2 = vld.sshfl [vmem:[#allocation1 + $0x8] sm:$0xff pattern:$0x75316420]  ;;  %v316_v51 = vsel %vm251_vm0, %v472_v48, %v315_v46 }
  0x18   : > { %v252_v3 = vsel %vm251_vm0, %v247_v1, -inf  ;;  %v259_v4 = vsel %vm251_vm0, %v248_v2, -inf  ;;  %v342_v1 = vand.u32 127, %v302_v32 }
  0x19   : > { %v253_v5 = vrot.slane %v252_v3, 4  ;;  %v260_v6 = vrot.slane %v259_v4, 4 }
  0x1b   : > { %v254_v7 = vmax.f32 %v252_v3, %v253_v5  ;;  %v261_v8 = vmax.f32 %v259_v4, %v260_v6 }
  0x1d   : > { %v255_v9 = vrot.slane %v254_v7, 2  ;;  %v262_v10 = vrot.slane %v261_v8, 2 }
  0x1f   : > { %v256_v11 = vmax.f32 %v254_v7, %v255_v9  ;;  %v263_v12 = vmax.f32 %v261_v8, %v262_v10 }
  0x21   : > { %v257_v13 = vrot.slane %v256_v11, 1  ;;  %v264_v14 = vrot.slane %v263_v12, 1 }
  0x23   : > { %v258_v15 = vmax.f32 %v256_v11, %v257_v13  ;;  %v265_v16 = vmax.f32 %v263_v12, %v264_v14 }
  0x25   : > { %v268_v17 = vrot.slane %v265_v16, 4 }
  0x27   : > { %v269_v18 = vsel %vm251_vm0, %v258_v15, %v268_v17 }
  0x28   : > { %v271_v19 = vsub.f32 %v243_v0, %v269_v18 }
  0x2a   : > { %v272_v20 = vmul.f32 1.442695, %v271_v19 }
  0x2c   : > { %502 = vpow2.f32 %v272_v20 }
  0x32   : > { %v503_v21 = vpop.eup %502 }
  0x33   : > { %275 = vst [vmem:[#allocation1] ss:$2 sm:$0xff] %v503_v21 }
  0x3a   : > { %v276_v22 = vld.sshfl [vmem:[#allocation1] sm:$0xff pattern:$0x75316420]  ;;  %v277_v23 = vld.sshfl [vmem:[#allocation1 + $0x8] sm:$0xff pattern:$0x75316420] }
  0x3b   : > { %v280_v24 = vsel %vm251_vm0, %v276_v22, 0.0  ;;  %v287_v25 = vsel %vm251_vm0, %v277_v23, 0.0 }
  0x3c   : > { %v281_v26 = vrot.slane %v280_v24, 4  ;;  %v288_v27 = vrot.slane %v287_v25, 4 }
  0x3e   : > { %v282_v28 = vadd.f32 %v281_v26, %v280_v24  ;;  %v289_v29 = vadd.f32 %v288_v27, %v287_v25 }
  0x40   : > { %v283_v30 = vrot.slane %v282_v28, 2  ;;  %v290_v31 = vrot.slane %v289_v29, 2 }
  0x42   : > { %v284_v34 = vadd.f32 %v283_v30, %v282_v28  ;;  %v291_v35 = vadd.f32 %v290_v31, %v289_v29 }
  0x44   : > { %v285_v36 = vrot.slane %v284_v34, 1  ;;  %v292_v37 = vrot.slane %v291_v35, 1 }
  0x46   : > { %v286_v40 = vadd.f32 %v285_v36, %v284_v34  ;;  %v293_v41 = vadd.f32 %v292_v37, %v291_v35 }
  0x48   : > { %504 = vrcp.f32 %v286_v40 }
  0x49   : > { %506 = vrcp.f32 %v293_v41 }
  0x4e   : > { %v505_v45 = vpop.eup %504 }
  0x4f   : > { %v507_v47 = vpop.eup %506 }
  0x50   : > { %v298_v49 = vrot.slane %v507_v47, 4 }
  0x52   : > { %v299_v50 = vsel %vm251_vm0, %v505_v45, %v298_v49 }
  0x53   : > { %v301_v52 = vmul.f32 %v503_v21, %v299_v50 }
  0x55   : > { %v318_v53 = vmul.f32 %v316_v51, %v301_v52  ;;  %v322_v54 = vadd.f32 %v316_v51, %v301_v52 }
  0x57   : > { %330 = vst [vmem:[#allocation1] ss:$2 sm:$0xff] %v318_v53 }
  0x5e   : > { %v331_v55 = vld.sshfl [vmem:[#allocation1] sm:$0xff pattern:$0x75316420]  ;;  %v332_v56 = vld.sshfl [vmem:[#allocation1 + $0x8] sm:$0xff pattern:$0x75316420] }
  0x5f   : > { %v335_v57 = vsel %vm251_vm0, %v331_v55, 0.0  ;;  %v336_v58 = vsel %vm251_vm0, %v332_v56, 0.0  ;;  %349 = vst [vmem:[#allocation1] ss:$2 sm:$0xff] %v322_v54 }
  0x60   : > { %v337_v59 = vadd.f32 %v336_v58, %v335_v57 }
  0x62   : > { %338 = vadd.xlane.f32.xlu0 %v337_v59 }
  0x66   : > { %v350_v60 = vld.sshfl [vmem:[#allocation1] sm:$0xff pattern:$0x75316420]  ;;  %v351_v61 = vld.sshfl [vmem:[#allocation1 + $0x8] sm:$0xff pattern:$0x75316420] }
  0x67   : > { %v354_v62 = vsel %vm251_vm0, %v350_v60, 0.0  ;;  %v355_v63 = vsel %vm251_vm0, %v351_v61, 0.0 }
  0x68   : > { %v356_v0 = vadd.f32 %v355_v63, %v354_v62 }
  0x6a   : > { %357 = vadd.xlane.f32.xlu0 %v356_v0 }
  0xd5   : > { %v339_v2 = vpop.xlane.xlu0 %338 }
  0xd6   : > { %v343_v3 = vperm.slane %v339_v2, %v342_v1 }
  0xd8   : > { %346 = vst.msk [vmem:[%s233_s26] sm:$0x1] %vm345_vm3, %v343_v3 }
  0xdd   : > { %v358_v4 = vpop.xlane.xlu0 %357 }
  0xde   : > { %v360_v5 = vperm.slane %v358_v4, %v342_v1 }
  0xe0   : > { %362 = vst.msk [vmem:[%s236_s29] sm:$0x1] %vm345_vm3, %v360_v5 }
  0xe1 PF: > { %s14_s14 = sadd.s32 1, %s530_s14   ;;  %s613_s12 = smov %s526_s13 }
  0xe2   : > { %p11_p5 = scmp.ge.s32.totalorder %s14_s14, 4   ;;  %s614_s13 = smov %s616_s15 }
  0xe4   :  { %13 = sbr.rel (!%p11_p5) target bundleno = 2 (0x2), region = 81 }

</bundles_post_ra>
